<compile_context>
chip_gen: v6e
topology: v6e:2x2x1
jax: 0.10.0
libtpu: 0.0.40
codegen_flags: <defaults>
</compile_context>

<pallas_src>
import jax
import jax.numpy as jnp
from jax.experimental import pallas as pl
from jax.experimental.pallas import tpu as pltpu

LANES = 128  # padded feature width (lane dimension)


# ----------------------------- Pallas kernel -------------------------------

def autoencoder_kernel(x_ref, w_ref, b_ref, latent_ref, recon_ref):
    """x_ref: [TB, 128]  w_ref: [6, 128, 128]  b_ref: [6, 128]
    latent_ref / recon_ref: [TB, 128] (lane-padded)."""

    def layer(h, k, relu=True):
        y = jnp.dot(h, w_ref[k], preferred_element_type=jnp.float32)
        y = y + b_ref[k][None, :]
        return jnp.maximum(y, 0.0) if relu else y

    h = x_ref[...]
    # ---- encode ----
    h = layer(h, 0)
    h = layer(h, 1)
    z = layer(h, 2)
    latent_ref[...] = z
    # ---- decode ----
    d = layer(z, 3)
    d = layer(d, 4)
    recon_ref[...] = layer(d, 5, relu=False)


# --------------------------- parameter packing ------------------------------

def pack_params(p):
    """Pack the 6 (weight [in,out], bias [out]) pairs into two padded slabs."""
    def pad_w(w):
        fi, fo = w.shape
        return jnp.zeros((LANES, LANES), jnp.float32).at[:fi, :fo].set(w)

    def pad_b(b):
        b = jnp.reshape(b, (-1,))
        return jnp.zeros((LANES,), jnp.float32).at[: b.shape[0]].set(b)

    w_keys = ["ew1", "ew2", "ew3", "dw1", "dw2", "dw3"]
    b_keys = ["eb1", "eb2", "eb3", "db1", "db2", "db3"]
    w_slab = jnp.stack([pad_w(p[k]) for k in w_keys])   # [6, 128, 128]
    b_slab = jnp.stack([pad_b(p[k]) for k in b_keys])   # [6, 128]
    return w_slab, b_slab


# ------------------------------ wrapper -------------------------------------

def autoencoder_forward(x, w_slab, b_slab, proto_size, *, tile_b=128):
    """x: [B, observation_size] float32.
    Returns (transform_input [B, proto], recon_input [B, obs])."""
    B, obs = x.shape

    # Batch tile: 128 rows when the batch is large, else round B up to a
    # multiple of 8 (f32 sublane granule).
    if B >= tile_b:
        tb = tile_b
    else:
        tb = max(8, ((B + 7) // 8) * 8)
    B_pad = ((B + tb - 1) // tb) * tb

    # Lane-pad the input to 128 and sublane-pad the batch.
    xp = jnp.zeros((B_pad, LANES), jnp.float32).at[:B, :obs].set(x)

    grid = (B_pad // tb,)
    latent_p, recon_p = pl.pallas_call(
        autoencoder_kernel,
        out_shape=(
            jax.ShapeDtypeStruct((B_pad, LANES), jnp.float32),
            jax.ShapeDtypeStruct((B_pad, LANES), jnp.float32),
        ),
        grid=grid,
        in_specs=[
            pl.BlockSpec((tb, LANES), lambda i: (i, 0)),          # activations
            pl.BlockSpec((6, LANES, LANES), lambda i: (0, 0, 0)),  # weights (resident)
            pl.BlockSpec((6, LANES), lambda i: (0, 0)),            # biases  (resident)
        ],
        out_specs=(
            pl.BlockSpec((tb, LANES), lambda i: (i, 0)),
            pl.BlockSpec((tb, LANES), lambda i: (i, 0)),
        ),
        compiler_params=pltpu.CompilerParams(
            dimension_semantics=("parallel",)),
    )(xp, w_slab, b_slab)

    return latent_p[:B, :proto_size], recon_p[:B, :obs]


# -------------------------- parameter construction --------------------------

def init_linear(key, fan_in, fan_out):
    """Mimics torch.nn.Linear default init (U[-1/sqrt(in), 1/sqrt(in)]).
    Weight stored as [in, out] (transposed vs torch), bias as [out]."""
    kw, kb = jax.random.split(key)
    bound = 1.0 / (fan_in ** 0.5)
    w = jax.random.uniform(kw, (fan_in, fan_out), jnp.float32, -bound, bound)
    b = jax.random.uniform(kb, (fan_out,), jnp.float32, -bound, bound)
    return w, b


def make_params(key, observation_size, proto_inner, proto_size):
    keys = jax.random.split(key, 6)
    p = {}
    p["ew1"], p["eb1"] = init_linear(keys[0], observation_size, proto_inner)
    p["ew2"], p["eb2"] = init_linear(keys[1], proto_inner, proto_inner)
    p["ew3"], p["eb3"] = init_linear(keys[2], proto_inner, proto_size)
    p["dw1"], p["db1"] = init_linear(keys[3], proto_size, proto_inner)
    p["dw2"], p["db2"] = init_linear(keys[4], proto_inner, proto_inner)
    p["dw3"], p["db3"] = init_linear(keys[5], proto_inner, observation_size)
    return p


def reference_forward(x, p):
    """Pure-JAX reference of the PyTorch forward."""
    relu = lambda v: jnp.maximum(v, 0.0)
    h = relu(x @ p["ew1"] + p["eb1"])
    h = relu(h @ p["ew2"] + p["eb2"])
    z = relu(h @ p["ew3"] + p["eb3"])
    d = relu(z @ p["dw1"] + p["db1"])
    d = relu(d @ p["dw2"] + p["db2"])
    r = d @ p["dw3"] + p["db3"]
    return z, r


if __name__ == "__main__":
    OBSERVATION_SIZE = 4
    PROTOTYPE_SIZE_INNER = 32
    PROTOTYPE_SIZE = 16
    BATCH = 2

    key = jax.random.PRNGKey(0)
    kx, kp, kx2 = jax.random.split(key, 3)
    params = make_params(kp, OBSERVATION_SIZE, PROTOTYPE_SIZE_INNER, PROTOTYPE_SIZE)
    w_slab, b_slab = pack_params(params)

    # --- small batch (module-spec shape) ---
    x = jax.random.normal(kx, (BATCH, OBSERVATION_SIZE), jnp.float32)
    latent, recon = autoencoder_forward(x, w_slab, b_slab, PROTOTYPE_SIZE)
    latent, recon = jax.block_until_ready((latent, recon))

    z_ref, r_ref = reference_forward(x, params)
    assert latent.shape == (BATCH, PROTOTYPE_SIZE)
    assert recon.shape == (BATCH, OBSERVATION_SIZE)
    assert jnp.allclose(latent, z_ref, atol=1e-5, rtol=1e-5)
    assert jnp.allclose(recon, r_ref, atol=1e-5, rtol=1e-5)

    # --- larger batch: exercises the multi-step grid with VMEM-resident weights ---
    B2 = 256
    x2 = jax.random.normal(kx2, (B2, OBSERVATION_SIZE), jnp.float32)
    latent2, recon2 = autoencoder_forward(x2, w_slab, b_slab, PROTOTYPE_SIZE)
    latent2, recon2 = jax.block_until_ready((latent2, recon2))
    z2_ref, r2_ref = reference_forward(x2, params)
    assert jnp.allclose(latent2, z2_ref, atol=1e-5, rtol=1e-5)
    assert jnp.allclose(recon2, r2_ref, atol=1e-5, rtol=1e-5)

    print("KERNEL_OK")
</pallas_src>

<mosaic_0001>
module attributes {stable_mosaic.version = 11 : i64} {
  func.func @autoencoder_kernel(%arg0: i32, %arg1: memref<8x128xf32, #tpu.memory_space<vmem>>, %arg2: memref<6x128x128xf32, #tpu.memory_space<vmem>>, %arg3: memref<6x128xf32, #tpu.memory_space<vmem>>, %arg4: memref<8x128xf32, #tpu.memory_space<vmem>>, %arg5: memref<8x128xf32, #tpu.memory_space<vmem>>) attributes {dimension_semantics = [#tpu.dimension_semantics<parallel>], iteration_bounds = array<i64: 1>, scalar_prefetch = 0 : i64, scratch_operands = 0 : i64, tpu.core_type = #tpu.core_type<tc>, window_params = [{transform_indices = @transform_0, window_bounds = array<i64: 8, 128>}, {pipeline_mode = #tpu.pipeline_mode<synchronous>, transform_indices = @transform_1, window_bounds = array<i64: 6, 128, 128>}, {pipeline_mode = #tpu.pipeline_mode<synchronous>, transform_indices = @transform_2, window_bounds = array<i64: 6, 128>}, {transform_indices = @transform_3, window_bounds = array<i64: 8, 128>}, {transform_indices = @transform_4, window_bounds = array<i64: 8, 128>}]} {
    %c0 = arith.constant 0 : index
    %c0_0 = arith.constant 0 : index
    %0 = vector.load %arg1[%c0, %c0_0] : memref<8x128xf32, #tpu.memory_space<vmem>>, vector<8x128xf32>
    %c0_1 = arith.constant 0 : index
    %c0_2 = arith.constant 0 : index
    %c0_3 = arith.constant 0 : index
    %1 = vector.load %arg2[%c0_1, %c0_2, %c0_3] : memref<6x128x128xf32, #tpu.memory_space<vmem>>, vector<1x128x128xf32>
    %2 = vector.shape_cast %1 : vector<1x128x128xf32> to vector<128x128xf32>
    %cst = arith.constant dense<0.000000e+00> : vector<8x128xf32>
    %3 = tpu.matmul %0, %2, %cst {dimension_numbers = #tpu.dot_dimension_numbers<[1], [0], [0], [1], [0, 0, 1, 1], [], []>} : vector<8x128xf32>, vector<128x128xf32>, vector<8x128xf32> -> vector<8x128xf32>
    %c0_4 = arith.constant 0 : index
    %c0_5 = arith.constant 0 : index
    %4 = vector.load %arg3[%c0_4, %c0_5] : memref<6x128xf32, #tpu.memory_space<vmem>>, vector<1x128xf32>
    %5 = vector.shape_cast %4 : vector<1x128xf32> to vector<128xf32>
    %6 = vector.shape_cast %5 : vector<128xf32> to vector<1x128xf32>
    %7 = vector.broadcast %6 : vector<1x128xf32> to vector<8x128xf32>
    %8 = arith.addf %3, %7 : vector<8x128xf32>
    %cst_6 = arith.constant 0.000000e+00 : f32
    %9 = vector.broadcast %cst_6 : f32 to vector<8x128xf32>
    %10 = arith.maximumf %8, %9 : vector<8x128xf32>
    %c1 = arith.constant 1 : index
    %c0_7 = arith.constant 0 : index
    %c0_8 = arith.constant 0 : index
    %11 = vector.load %arg2[%c1, %c0_7, %c0_8] : memref<6x128x128xf32, #tpu.memory_space<vmem>>, vector<1x128x128xf32>
    %12 = vector.shape_cast %11 : vector<1x128x128xf32> to vector<128x128xf32>
    %cst_9 = arith.constant dense<0.000000e+00> : vector<8x128xf32>
    %13 = tpu.matmul %10, %12, %cst_9 {dimension_numbers = #tpu.dot_dimension_numbers<[1], [0], [0], [1], [0, 0, 1, 1], [], []>} : vector<8x128xf32>, vector<128x128xf32>, vector<8x128xf32> -> vector<8x128xf32>
    %c1_10 = arith.constant 1 : index
    %c0_11 = arith.constant 0 : index
    %14 = vector.load %arg3[%c1_10, %c0_11] : memref<6x128xf32, #tpu.memory_space<vmem>>, vector<1x128xf32>
    %15 = vector.shape_cast %14 : vector<1x128xf32> to vector<128xf32>
    %16 = vector.shape_cast %15 : vector<128xf32> to vector<1x128xf32>
    %17 = vector.broadcast %16 : vector<1x128xf32> to vector<8x128xf32>
    %18 = arith.addf %13, %17 : vector<8x128xf32>
    %cst_12 = arith.constant 0.000000e+00 : f32
    %19 = vector.broadcast %cst_12 : f32 to vector<8x128xf32>
    %20 = arith.maximumf %18, %19 : vector<8x128xf32>
    %c2 = arith.constant 2 : index
    %c0_13 = arith.constant 0 : index
    %c0_14 = arith.constant 0 : index
    %21 = vector.load %arg2[%c2, %c0_13, %c0_14] : memref<6x128x128xf32, #tpu.memory_space<vmem>>, vector<1x128x128xf32>
    %22 = vector.shape_cast %21 : vector<1x128x128xf32> to vector<128x128xf32>
    %cst_15 = arith.constant dense<0.000000e+00> : vector<8x128xf32>
    %23 = tpu.matmul %20, %22, %cst_15 {dimension_numbers = #tpu.dot_dimension_numbers<[1], [0], [0], [1], [0, 0, 1, 1], [], []>} : vector<8x128xf32>, vector<128x128xf32>, vector<8x128xf32> -> vector<8x128xf32>
    %c2_16 = arith.constant 2 : index
    %c0_17 = arith.constant 0 : index
    %24 = vector.load %arg3[%c2_16, %c0_17] : memref<6x128xf32, #tpu.memory_space<vmem>>, vector<1x128xf32>
    %25 = vector.shape_cast %24 : vector<1x128xf32> to vector<128xf32>
    %26 = vector.shape_cast %25 : vector<128xf32> to vector<1x128xf32>
    %27 = vector.broadcast %26 : vector<1x128xf32> to vector<8x128xf32>
    %28 = arith.addf %23, %27 : vector<8x128xf32>
    %cst_18 = arith.constant 0.000000e+00 : f32
    %29 = vector.broadcast %cst_18 : f32 to vector<8x128xf32>
    %30 = arith.maximumf %28, %29 : vector<8x128xf32>
    %c0_19 = arith.constant 0 : index
    %c0_20 = arith.constant 0 : index
    %31 = vector.load %arg4[%c0_19, %c0_20] : memref<8x128xf32, #tpu.memory_space<vmem>>, vector<8x128xf32>
    tpu.vector_store %arg4[%c0_19, %c0_20], %30 {strides = array<i32>} : memref<8x128xf32, #tpu.memory_space<vmem>>, vector<8x128xf32>,
    %c3 = arith.constant 3 : index
    %c0_21 = arith.constant 0 : index
    %c0_22 = arith.constant 0 : index
    %32 = vector.load %arg2[%c3, %c0_21, %c0_22] : memref<6x128x128xf32, #tpu.memory_space<vmem>>, vector<1x128x128xf32>
    %33 = vector.shape_cast %32 : vector<1x128x128xf32> to vector<128x128xf32>
    %cst_23 = arith.constant dense<0.000000e+00> : vector<8x128xf32>
    %34 = tpu.matmul %30, %33, %cst_23 {dimension_numbers = #tpu.dot_dimension_numbers<[1], [0], [0], [1], [0, 0, 1, 1], [], []>} : vector<8x128xf32>, vector<128x128xf32>, vector<8x128xf32> -> vector<8x128xf32>
    %c3_24 = arith.constant 3 : index
    %c0_25 = arith.constant 0 : index
    %35 = vector.load %arg3[%c3_24, %c0_25] : memref<6x128xf32, #tpu.memory_space<vmem>>, vector<1x128xf32>
    %36 = vector.shape_cast %35 : vector<1x128xf32> to vector<128xf32>
    %37 = vector.shape_cast %36 : vector<128xf32> to vector<1x128xf32>
    %38 = vector.broadcast %37 : vector<1x128xf32> to vector<8x128xf32>
    %39 = arith.addf %34, %38 : vector<8x128xf32>
    %cst_26 = arith.constant 0.000000e+00 : f32
    %40 = vector.broadcast %cst_26 : f32 to vector<8x128xf32>
    %41 = arith.maximumf %39, %40 : vector<8x128xf32>
    %c4 = arith.constant 4 : index
    %c0_27 = arith.constant 0 : index
    %c0_28 = arith.constant 0 : index
    %42 = vector.load %arg2[%c4, %c0_27, %c0_28] : memref<6x128x128xf32, #tpu.memory_space<vmem>>, vector<1x128x128xf32>
    %43 = vector.shape_cast %42 : vector<1x128x128xf32> to vector<128x128xf32>
    %cst_29 = arith.constant dense<0.000000e+00> : vector<8x128xf32>
    %44 = tpu.matmul %41, %43, %cst_29 {dimension_numbers = #tpu.dot_dimension_numbers<[1], [0], [0], [1], [0, 0, 1, 1], [], []>} : vector<8x128xf32>, vector<128x128xf32>, vector<8x128xf32> -> vector<8x128xf32>
    %c4_30 = arith.constant 4 : index
    %c0_31 = arith.constant 0 : index
    %45 = vector.load %arg3[%c4_30, %c0_31] : memref<6x128xf32, #tpu.memory_space<vmem>>, vector<1x128xf32>
    %46 = vector.shape_cast %45 : vector<1x128xf32> to vector<128xf32>
    %47 = vector.shape_cast %46 : vector<128xf32> to vector<1x128xf32>
    %48 = vector.broadcast %47 : vector<1x128xf32> to vector<8x128xf32>
    %49 = arith.addf %44, %48 : vector<8x128xf32>
    %cst_32 = arith.constant 0.000000e+00 : f32
    %50 = vector.broadcast %cst_32 : f32 to vector<8x128xf32>
    %51 = arith.maximumf %49, %50 : vector<8x128xf32>
    %c5 = arith.constant 5 : index
    %c0_33 = arith.constant 0 : index
    %c0_34 = arith.constant 0 : index
    %52 = vector.load %arg2[%c5, %c0_33, %c0_34] : memref<6x128x128xf32, #tpu.memory_space<vmem>>, vector<1x128x128xf32>
    %53 = vector.shape_cast %52 : vector<1x128x128xf32> to vector<128x128xf32>
    %cst_35 = arith.constant dense<0.000000e+00> : vector<8x128xf32>
    %54 = tpu.matmul %51, %53, %cst_35 {dimension_numbers = #tpu.dot_dimension_numbers<[1], [0], [0], [1], [0, 0, 1, 1], [], []>} : vector<8x128xf32>, vector<128x128xf32>, vector<8x128xf32> -> vector<8x128xf32>
    %c5_36 = arith.constant 5 : index
    %c0_37 = arith.constant 0 : index
    %55 = vector.load %arg3[%c5_36, %c0_37] : memref<6x128xf32, #tpu.memory_space<vmem>>, vector<1x128xf32>
    %56 = vector.shape_cast %55 : vector<1x128xf32> to vector<128xf32>
    %57 = vector.shape_cast %56 : vector<128xf32> to vector<1x128xf32>
    %58 = vector.broadcast %57 : vector<1x128xf32> to vector<8x128xf32>
    %59 = arith.addf %54, %58 : vector<8x128xf32>
    %c0_38 = arith.constant 0 : index
    %c0_39 = arith.constant 0 : index
    %60 = vector.load %arg5[%c0_38, %c0_39] : memref<8x128xf32, #tpu.memory_space<vmem>>, vector<8x128xf32>
    tpu.vector_store %arg5[%c0_38, %c0_39], %59 {strides = array<i32>} : memref<8x128xf32, #tpu.memory_space<vmem>>, vector<8x128xf32>,
    return
  }
  func.func @transform_0(%arg0: i32) -> (i32, i32) {
    %c0_i32 = arith.constant 0 : i32
    %c0_i32_0 = arith.constant 0 : i32
    return %arg0, %c0_i32 : i32, i32
  }
  func.func @transform_1(%arg0: i32) -> (i32, i32, i32) {
    %c0_i32 = arith.constant 0 : i32
    %c0_i32_0 = arith.constant 0 : i32
    %c0_i32_1 = arith.constant 0 : i32
    %c0_i32_2 = arith.constant 0 : i32
    return %c0_i32, %c0_i32_0, %c0_i32_1 : i32, i32, i32
  }
  func.func @transform_2(%arg0: i32) -> (i32, i32) {
    %c0_i32 = arith.constant 0 : i32
    %c0_i32_0 = arith.constant 0 : i32
    %c0_i32_1 = arith.constant 0 : i32
    return %c0_i32, %c0_i32_0 : i32, i32
  }
  func.func @transform_3(%arg0: i32) -> (i32, i32) {
    %c0_i32 = arith.constant 0 : i32
    %c0_i32_0 = arith.constant 0 : i32
    return %arg0, %c0_i32 : i32, i32
  }
  func.func @transform_4(%arg0: i32) -> (i32, i32) {
    %c0_i32 = arith.constant 0 : i32
    %c0_i32_0 = arith.constant 0 : i32
    return %arg0, %c0_i32 : i32, i32
  }
}

</mosaic_0001>

<bundles_post_ra>
// kernel: tpu_custom_call.1
= control target key start
LH: loop header
LB: loop body
LE: loop exit
PB: predicated region body
PF: predicated region fallthrough
CT: control target
= control target key end

     0   :  { %10 = vsyncpa [#allocation3], 0  ;;  %s1236_s0 = inlined_call_operand.hbm [shape: f32[8,128], index: 0, kind: input, shape index: {}]   ;;  %s1237_s1 = inlined_call_operand.hbm [shape: f32[6,128,128], index: 1, kind: input, shape index: {}]   ;;  %s1238_s2 = inlined_call_operand.hbm [shape: f32[6,128], index: 2, kind: input, shape index: {}]   ;;  %s1239_s3 = inlined_call_operand.hbm [shape: f32[8,128], index: 3, kind: output, shape index: {0}]   ;;  %s1240_s4 = inlined_call_operand.hbm [shape: f32[8,128], index: 4, kind: output, shape index: {1}]  }
   0x1   :  { %11 = vsyncpa [#allocation6], 0 }
   0x2   :  { %12 = vsyncpa [#allocation4], 0 }
   0x3   :  { %13 = vsyncpa [#allocation10], 0  ;;  %s1079_s15 = smov [#allocation5]  }
   0x4   :  { %s29_s16 = sshll.u32 %s1079_s15, 4  ;;  %s30_s16 = int_to_ptr.vmem [resolvable:$true] %s29_s16 }
   0x5   :  { %s979_s17 = scalar_lea.vmem %s30_s16, 12288  ;;  %p984_p1 = scmp.lt.s32.totalorder %s30_s16, %s30_s16 }
   0x6   :  { %p980_p0 = scmp.ne.s32.totalorder %s30_s16, %s979_s17  ;;  %p985_p2 = scmp.lt.s32.totalorder %s979_s17, %s979_s17 }
   0x8   :  { %p986_p3 = por %p985_p2, %p984_p1 }
   0xa   :  { %p987_p4 = pnand %p986_p3, %p980_p0 }
   0xc   :  { %990 = shalt.err (!%p987_p4)
}
   0xd   :  { %s1080_s18 = smov 128   ;;  %s1081_s19 = smov 8  }
   0xe   :  { %35 = dma.hbm_to_vmem [thread:$0]  %s1237_s1, 12288, %s30_s16, [#allocation6], %s1080_s18, %s1080_s18, %s1081_s19  }
   0xf   :  { %s1082_s22 = smov [#allocation2]   ;;  %s1083_s24 = smov [#allocation7]  }
  0x10   :  { %s20_s23 = sshll.u32 %s1082_s22, 4  ;;  %s42_s25 = sshll.u32 %s1083_s24, 4  ;;  %s21_s23 = int_to_ptr.vmem [resolvable:$true] %s20_s23  ;;  %s43_s25 = int_to_ptr.vmem [resolvable:$true] %s42_s25 }
  0x11   :  { %s999_s26 = scalar_lea.vmem %s21_s23, 128  ;;  %p1004_p6 = scmp.lt.s32.totalorder %s21_s23, %s21_s23 }
  0x12   :  { %p1000_p5 = scmp.ne.s32.totalorder %s21_s23, %s999_s26  ;;  %p1005_p7 = scmp.lt.s32.totalorder %s999_s26, %s999_s26 }
  0x14   :  { %p1006_p8 = por %p1005_p7, %p1004_p6 }
  0x16   :  { %p1007_p9 = pnand %p1006_p8, %p1000_p5 }
  0x18   :  { %1010 = shalt.err (!%p1007_p9)
}
  0x19   :  { %23 = dma.hbm_to_vmem [thread:$0]  %s1236_s0, 128, %s21_s23, [#allocation3]  }
  0x1a   :  { %s1019_s29 = scalar_lea.vmem %s43_s25, 128  ;;  %p1024_p11 = scmp.lt.s32.totalorder %s43_s25, %s43_s25 }
  0x1b   :  { %p1020_p10 = scmp.ne.s32.totalorder %s43_s25, %s1019_s29  ;;  %p1025_p12 = scmp.lt.s32.totalorder %s1019_s29, %s1019_s29 }
  0x1d   :  { %p1026_p13 = por %p1025_p12, %p1024_p11 }
  0x1f   :  { %p1027_p0 = pnand %p1026_p13, %p1020_p10 }
  0x21   :  { %1030 = shalt.err (!%p1027_p0)
}
  0x22   :  { %45 = dma.hbm_to_vmem [thread:$0]  %s1238_s2, 128, %s43_s25, [#allocation6]  }
  0x23   :  { %1071 = dma.done.wait [#allocation3], 128  }
  0x24   :  { %1072 = vsyncadd [#allocation3], 4294967168 }
  0x25   :  { %1073 = dma.done.wait [#allocation6], 12416  }
  0x26   :  { %1074 = vsyncadd [#allocation6], 4294954880  ;;  %v1084_v0 = vmov 0.0   ;;  %vm1085_vm0 = vmmov 0   ;;  %v71_v1 = vld [vmem:[#allocation5 + $0x78] sm:$0xff]  ;;  %v70_v2 = vld [vmem:[#allocation5 + $0x70] sm:$0xff] }
  0x27   :  { %752 = vmatprep.subr.mxu0 %v1084_v0  ;;  %784 = vmatprep.mubr.msk.f32.mxu0 %vm1085_vm0, %v1084_v0  ;;  %v69_v3 = vld [vmem:[#allocation5 + $0x68] sm:$0xff]  ;;  %v68_v4 = vld [vmem:[#allocation5 + $0x60] sm:$0xff]  ;;  %v164_v5 = vld [vmem:[#allocation5 + $0xf8] sm:$0xff]  ;;  %s1086_s0 = smov [#allocation8]  }
  0x28   :  { %787 = vmatprep.subr.mxu1 %v1084_v0  ;;  %819 = vmatprep.mubr.msk.f32.mxu1 %vm1085_vm0, %v1084_v0  ;;  %v67_v6 = vld [vmem:[#allocation5 + $0x58] sm:$0xff]  ;;  %v163_v7 = vld [vmem:[#allocation5 + $0xf0] sm:$0xff]  ;;  %v162_v8 = vld [vmem:[#allocation5 + $0xe8] sm:$0xff]  ;;  %s620_s2 = sshll.u32 %s1086_s0, 4  ;;  %s621_s2 = int_to_ptr.vmem [resolvable:$true] %s620_s2 }
  0x29   :  { %753 = vmatpush3.msra.mxu0 %v71_v1  ;;  %788 = vmatpush3.msra.mxu1 %v164_v5  ;;  %v66_v9 = vld [vmem:[#allocation5 + $0x50] sm:$0xff]  ;;  %v161_v10 = vld [vmem:[#allocation5 + $0xe0] sm:$0xff]  ;;  %v65_v11 = vld [vmem:[#allocation5 + $0x48] sm:$0xff]  ;;  %s1031_s5 = scalar_lea.vmem %s621_s2, 128  ;;  %p1036_p2 = scmp.lt.s32.totalorder %s621_s2, %s621_s2 }
  0x2a   :  { %754 = vmatprep.subr.mxu0 %v1084_v0  ;;  %789 = vmatprep.subr.mxu1 %v1084_v0  ;;  %v160_v12 = vld [vmem:[#allocation5 + $0xd8] sm:$0xff]  ;;  %v64_v13 = vld [vmem:[#allocation5 + $0x40] sm:$0xff]  ;;  %v159_v14 = vld [vmem:[#allocation5 + $0xd0] sm:$0xff]  ;;  %p1032_p1 = scmp.ne.s32.totalorder %s621_s2, %s1031_s5  ;;  %p1037_p3 = scmp.lt.s32.totalorder %s1031_s5, %s1031_s5 }
  0x2b   :  { %755 = vmatpush3.msra.mxu0 %v70_v2  ;;  %790 = vmatpush3.msra.mxu1 %v163_v7  ;;  %v63_v15 = vld [vmem:[#allocation5 + $0x38] sm:$0xff]  ;;  %v158_v16 = vld [vmem:[#allocation5 + $0xc8] sm:$0xff]  ;;  %v62_v17 = vld [vmem:[#allocation5 + $0x30] sm:$0xff] }
  0x2c   :  { %756 = vmatprep.subr.mxu0 %v1084_v0  ;;  %791 = vmatprep.subr.mxu1 %v1084_v0  ;;  %v157_v18 = vld [vmem:[#allocation5 + $0xc0] sm:$0xff]  ;;  %v61_v19 = vld [vmem:[#allocation5 + $0x28] sm:$0xff]  ;;  %v156_v20 = vld [vmem:[#allocation5 + $0xb8] sm:$0xff]  ;;  %p1038_p4 = por %p1037_p3, %p1036_p2 }
  0x2d   :  { %757 = vmatpush3.msra.mxu0 %v69_v3  ;;  %792 = vmatpush3.msra.mxu1 %v162_v8  ;;  %v60_v21 = vld [vmem:[#allocation5 + $0x20] sm:$0xff]  ;;  %v155_v22 = vld [vmem:[#allocation5 + $0xb0] sm:$0xff]  ;;  %v59_v23 = vld [vmem:[#allocation5 + $0x18] sm:$0xff] }
  0x2e   :  { %758 = vmatprep.subr.mxu0 %v1084_v0  ;;  %793 = vmatprep.subr.mxu1 %v1084_v0  ;;  %v154_v24 = vld [vmem:[#allocation5 + $0xa8] sm:$0xff]  ;;  %v58_v25 = vld [vmem:[#allocation5 + $0x10] sm:$0xff]  ;;  %v153_v26 = vld [vmem:[#allocation5 + $0xa0] sm:$0xff]  ;;  %p1039_p5 = pnand %p1038_p4, %p1032_p1 }
  0x2f   :  { %759 = vmatpush3.msra.mxu0 %v68_v4  ;;  %794 = vmatpush3.msra.mxu1 %v161_v10  ;;  %v57_v27 = vld [vmem:[#allocation5 + $0x8] sm:$0xff]  ;;  %v152_v28 = vld [vmem:[#allocation5 + $0x98] sm:$0xff]  ;;  %v56_v29 = vld [vmem:[#allocation5] sm:$0xff] }
  0x30   :  { %760 = vmatprep.subr.mxu0 %v1084_v0  ;;  %795 = vmatprep.subr.mxu1 %v1084_v0  ;;  %v55_v30 = vld [vmem:[#allocation2] sm:$0xff]  ;;  %v151_v31 = vld [vmem:[#allocation5 + $0x90] sm:$0xff]  ;;  %v150_v32 = vld [vmem:[#allocation5 + $0x88] sm:$0xff] }
  0x31   :  { %761 = vmatpush3.msra.mxu0 %v67_v6  ;;  %796 = vmatpush3.msra.mxu1 %v160_v12  ;;  %v149_v33 = vld [vmem:[#allocation5 + $0x80] sm:$0xff]  ;;  %v257_v34 = vld [vmem:[#allocation5 + $0x178] sm:$0xff]  ;;  %v256_v35 = vld [vmem:[#allocation5 + $0x170] sm:$0xff] }
  0x32   :  { %762 = vmatprep.subr.mxu0 %v1084_v0  ;;  %797 = vmatprep.subr.mxu1 %v1084_v0  ;;  %v255_v36 = vld [vmem:[#allocation5 + $0x168] sm:$0xff]  ;;  %v254_v37 = vld [vmem:[#allocation5 + $0x160] sm:$0xff]  ;;  %v253_v38 = vld [vmem:[#allocation5 + $0x158] sm:$0xff] }
  0x33   :  { %763 = vmatpush3.msra.mxu0 %v66_v9  ;;  %798 = vmatpush3.msra.mxu1 %v159_v14  ;;  %v252_v39 = vld [vmem:[#allocation5 + $0x150] sm:$0xff]  ;;  %v251_v40 = vld [vmem:[#allocation5 + $0x148] sm:$0xff]  ;;  %v250_v41 = vld [vmem:[#allocation5 + $0x140] sm:$0xff] }
  0x34   :  { %764 = vmatprep.subr.mxu0 %v1084_v0  ;;  %799 = vmatprep.subr.mxu1 %v1084_v0  ;;  %v249_v42 = vld [vmem:[#allocation5 + $0x138] sm:$0xff]  ;;  %v248_v43 = vld [vmem:[#allocation5 + $0x130] sm:$0xff]  ;;  %v247_v44 = vld [vmem:[#allocation5 + $0x128] sm:$0xff] }
  0x35   :  { %765 = vmatpush3.msra.mxu0 %v65_v11  ;;  %800 = vmatpush3.msra.mxu1 %v158_v16  ;;  %v246_v45 = vld [vmem:[#allocation5 + $0x120] sm:$0xff]  ;;  %v245_v46 = vld [vmem:[#allocation5 + $0x118] sm:$0xff]  ;;  %v244_v52 = vld [vmem:[#allocation5 + $0x110] sm:$0xff] }
  0x36   :  { %766 = vmatprep.subr.mxu0 %v1084_v0  ;;  %801 = vmatprep.subr.mxu1 %v1084_v0  ;;  %v644_v47 = vld [vmem:[#allocation7] ss:$0 sm:$0xff]  ;;  %v243_v53 = vld [vmem:[#allocation5 + $0x108] sm:$0xff]  ;;  %v351_v55 = vld [vmem:[#allocation5 + $0x1f8] sm:$0xff] }
  0x37   :  { %767 = vmatpush3.msra.mxu0 %v64_v13  ;;  %802 = vmatpush3.msra.mxu1 %v157_v18  ;;  %v242_v54 = vld [vmem:[#allocation5 + $0x100] sm:$0xff]  ;;  %v350_v56 = vld [vmem:[#allocation5 + $0x1f0] sm:$0xff]  ;;  %v349_v57 = vld [vmem:[#allocation5 + $0x1e8] sm:$0xff] }
  0x38   :  { %768 = vmatprep.subr.mxu0 %v1084_v0  ;;  %803 = vmatprep.subr.mxu1 %v1084_v0  ;;  %v348_v58 = vld [vmem:[#allocation5 + $0x1e0] sm:$0xff]  ;;  %v347_v59 = vld [vmem:[#allocation5 + $0x1d8] sm:$0xff]  ;;  %v346_v60 = vld [vmem:[#allocation5 + $0x1d0] sm:$0xff] }
  0x39   :  { %769 = vmatpush3.msra.mxu0 %v63_v15  ;;  %804 = vmatpush3.msra.mxu1 %v156_v20  ;;  %v345_v61 = vld [vmem:[#allocation5 + $0x1c8] sm:$0xff]  ;;  %v344_v62 = vld [vmem:[#allocation5 + $0x1c0] sm:$0xff]  ;;  %v343_v63 = vld [vmem:[#allocation5 + $0x1b8] sm:$0xff] }
  0x3a   :  { %770 = vmatprep.subr.mxu0 %v1084_v0  ;;  %805 = vmatprep.subr.mxu1 %v1084_v0  ;;  %v342_v1 = vld [vmem:[#allocation5 + $0x1b0] sm:$0xff]  ;;  %v341_v2 = vld [vmem:[#allocation5 + $0x1a8] sm:$0xff]  ;;  %v340_v3 = vld [vmem:[#allocation5 + $0x1a0] sm:$0xff] }
  0x3b   :  { %771 = vmatpush3.msra.mxu0 %v62_v17  ;;  %806 = vmatpush3.msra.mxu1 %v155_v22  ;;  %v339_v4 = vld [vmem:[#allocation5 + $0x198] sm:$0xff]  ;;  %v645_v5 = vld [vmem:[#allocation7 + $0x1] ss:$0 sm:$0xff]  ;;  %v338_v10 = vld [vmem:[#allocation5 + $0x190] sm:$0xff] }
  0x3c   :  { %772 = vmatprep.subr.mxu0 %v1084_v0  ;;  %807 = vmatprep.subr.mxu1 %v1084_v0  ;;  %v337_v11 = vld [vmem:[#allocation5 + $0x188] sm:$0xff]  ;;  %v336_v12 = vld [vmem:[#allocation5 + $0x180] sm:$0xff]  ;;  %v444_v13 = vld [vmem:[#allocation5 + $0x278] sm:$0xff] }
  0x3d   :  { %773 = vmatpush3.msra.mxu0 %v61_v19  ;;  %808 = vmatpush3.msra.mxu1 %v154_v24  ;;  %v443_v14 = vld [vmem:[#allocation5 + $0x270] sm:$0xff]  ;;  %v442_v15 = vld [vmem:[#allocation5 + $0x268] sm:$0xff]  ;;  %v441_v16 = vld [vmem:[#allocation5 + $0x260] sm:$0xff] }
  0x3e   :  { %774 = vmatprep.subr.mxu0 %v1084_v0  ;;  %809 = vmatprep.subr.mxu1 %v1084_v0  ;;  %v440_v17 = vld [vmem:[#allocation5 + $0x258] sm:$0xff]  ;;  %v439_v18 = vld [vmem:[#allocation5 + $0x250] sm:$0xff]  ;;  %v438_v19 = vld [vmem:[#allocation5 + $0x248] sm:$0xff] }
  0x3f   :  { %775 = vmatpush3.msra.mxu0 %v60_v21  ;;  %810 = vmatpush3.msra.mxu1 %v153_v26  ;;  %v437_v20 = vld [vmem:[#allocation5 + $0x240] sm:$0xff]  ;;  %v436_v21 = vld [vmem:[#allocation5 + $0x238] sm:$0xff]  ;;  %v435_v22 = vld [vmem:[#allocation5 + $0x230] sm:$0xff] }
  0x40   :  { %776 = vmatprep.subr.mxu0 %v1084_v0  ;;  %811 = vmatprep.subr.mxu1 %v1084_v0  ;;  %v433_v24 = vld [vmem:[#allocation5 + $0x220] sm:$0xff] }
  0x41   :  { %777 = vmatpush3.msra.mxu0 %v59_v23  ;;  %812 = vmatpush3.msra.mxu1 %v152_v28  ;;  %v434_v23 = vld [vmem:[#allocation5 + $0x228] sm:$0xff]  ;;  %v646_v26 = vld [vmem:[#allocation7 + $0x2] ss:$0 sm:$0xff] }
  0x42   :  { %778 = vmatprep.subr.mxu0 %v1084_v0  ;;  %813 = vmatprep.subr.mxu1 %v1084_v0 }
  0x43   :  { %779 = vmatpush3.msra.mxu0 %v58_v25  ;;  %814 = vmatpush3.msra.mxu1 %v151_v31  ;;  %v432_v25 = vld [vmem:[#allocation5 + $0x218] sm:$0xff]  ;;  %v431_v31 = vld [vmem:[#allocation5 + $0x210] sm:$0xff] }
  0x44   :  { %780 = vmatprep.subr.mxu0 %v1084_v0  ;;  %815 = vmatprep.subr.mxu1 %v1084_v0 }
  0x45   :  { %781 = vmatpush3.msra.mxu0 %v57_v27  ;;  %816 = vmatpush3.msra.mxu1 %v150_v32  ;;  %v430_v32 = vld [vmem:[#allocation5 + $0x208] sm:$0xff] }
  0x46   :  { %782 = vmatprep.subr.mxu0 %v1084_v0  ;;  %817 = vmatprep.subr.mxu1 %v1084_v0 }
  0x47   :  { %783 = vmatpush3.msra.mxu0 %v56_v29  ;;  %818 = vmatpush3.msra.mxu1 %v149_v33  ;;  %v429_v33 = vld [vmem:[#allocation5 + $0x200] sm:$0xff] }
  0x48   :  { %785 = vmatmul.mubr.f32.vlgmr.msra.gmra.mxu0 %v55_v30  ;;  %822 = vmatprep.subr.mxu0 %v1084_v0 }
  0x49   :  { %854 = vmatprep.mubr.msk.f32.mxu0 %vm1085_vm0, %v1084_v0  ;;  %857 = vmatprep.subr.mxu1 %v1084_v0 }
  0x4a   :  { %823 = vmatpush3.msra.mxu0 %v257_v34  ;;  %v537_v34 = vld [vmem:[#allocation5 + $0x2f8] sm:$0xff] }
  0x4b   :  { %824 = vmatprep.subr.mxu0 %v1084_v0 }
  0x4c   :  { %825 = vmatpush3.msra.mxu0 %v256_v35  ;;  %v536_v35 = vld [vmem:[#allocation5 + $0x2f0] sm:$0xff] }
  0x4d   :  { %826 = vmatprep.subr.mxu0 %v1084_v0 }
  0x4e   :  { %827 = vmatpush3.msra.mxu0 %v255_v36  ;;  %v535_v36 = vld [vmem:[#allocation5 + $0x2e8] sm:$0xff] }
  0x4f   :  { %828 = vmatprep.subr.mxu0 %v1084_v0 }
  0x50   :  { %829 = vmatpush3.msra.mxu0 %v254_v37  ;;  %v534_v37 = vld [vmem:[#allocation5 + $0x2e0] sm:$0xff] }
  0x51   :  { %830 = vmatprep.subr.mxu0 %v1084_v0 }
  0x52   :  { %831 = vmatpush3.msra.mxu0 %v253_v38  ;;  %v533_v38 = vld [vmem:[#allocation5 + $0x2d8] sm:$0xff] }
  0x53   :  { %832 = vmatprep.subr.mxu0 %v1084_v0 }
  0x54   :  { %833 = vmatpush3.msra.mxu0 %v252_v39  ;;  %v532_v39 = vld [vmem:[#allocation5 + $0x2d0] sm:$0xff] }
  0x55   :  { %834 = vmatprep.subr.mxu0 %v1084_v0 }
  0x56   :  { %835 = vmatpush3.msra.mxu0 %v251_v40  ;;  %v531_v40 = vld [vmem:[#allocation5 + $0x2c8] sm:$0xff] }
  0x57   :  { %836 = vmatprep.subr.mxu0 %v1084_v0 }
  0x58   :  { %837 = vmatpush3.msra.mxu0 %v250_v41  ;;  %v530_v41 = vld [vmem:[#allocation5 + $0x2c0] sm:$0xff] }
  0x59   :  { %838 = vmatprep.subr.mxu0 %v1084_v0 }
  0x5a   :  { %839 = vmatpush3.msra.mxu0 %v249_v42  ;;  %v529_v42 = vld [vmem:[#allocation5 + $0x2b8] sm:$0xff] }
  0x5b   :  { %840 = vmatprep.subr.mxu0 %v1084_v0 }
  0x5c   :  { %841 = vmatpush3.msra.mxu0 %v248_v43  ;;  %v528_v43 = vld [vmem:[#allocation5 + $0x2b0] sm:$0xff] }
  0x5d   :  { %842 = vmatprep.subr.mxu0 %v1084_v0 }
  0x5e   :  { %843 = vmatpush3.msra.mxu0 %v247_v44  ;;  %v527_v44 = vld [vmem:[#allocation5 + $0x2a8] sm:$0xff] }
  0x5f   :  { %844 = vmatprep.subr.mxu0 %v1084_v0 }
  0x60   :  { %845 = vmatpush3.msra.mxu0 %v246_v45  ;;  %v526_v45 = vld [vmem:[#allocation5 + $0x2a0] sm:$0xff] }
  0x61   :  { %846 = vmatprep.subr.mxu0 %v1084_v0 }
  0x62   :  { %847 = vmatpush3.msra.mxu0 %v245_v46  ;;  %v525_v46 = vld [vmem:[#allocation5 + $0x298] sm:$0xff] }
  0x63   :  { %848 = vmatprep.subr.mxu0 %v1084_v0 }
  0x64   :  { %849 = vmatpush3.msra.mxu0 %v244_v52  ;;  %v524_v52 = vld [vmem:[#allocation5 + $0x290] sm:$0xff] }
  0x65   :  { %850 = vmatprep.subr.mxu0 %v1084_v0 }
  0x66   :  { %851 = vmatpush3.msra.mxu0 %v243_v53  ;;  %v523_v53 = vld [vmem:[#allocation5 + $0x288] sm:$0xff] }
  0x67   :  { %852 = vmatprep.subr.mxu0 %v1084_v0 }
  0x68   :  { %853 = vmatpush3.msra.mxu0 %v242_v54  ;;  %v522_v54 = vld [vmem:[#allocation5 + $0x280] sm:$0xff] }
  0x69   :  { %892 = vmatprep.subr.mxu0 %v1084_v0 }
 0x108   :  { %v143_v48 = vpop.f32.mrf.mxu0 }
 0x109   :  { %v144_v49 = vadd.f32 %v644_v47, %v143_v48  ;;  %v647_v47 = vld [vmem:[#allocation7 + $0x3] ss:$0 sm:$0xff] }
 0x10a   :  { %v786_v50 = vpop.f32.mrf.mxu0 }
 0x10b   :  { %v147_v51 = vmax.f32 %v144_v49, 0.0 }
 0x10d   :  { %820 = vmatmul.mubr.f32.vlgmr.msra.gmra.mxu1 %v147_v51 }
 0x10e   :  { %889 = vmatprep.mubr.msk.f32.mxu1 %vm1085_vm0, %v1084_v0  ;;  %858 = vmatpush3.msra.mxu1 %v351_v55  ;;  %v648_v55 = vld [vmem:[#allocation7 + $0x4] ss:$0 sm:$0xff] }
 0x10f   :  { %859 = vmatprep.subr.mxu1 %v1084_v0 }
 0x110   :  { %860 = vmatpush3.msra.mxu1 %v350_v56 }
 0x111   :  { %861 = vmatprep.subr.mxu1 %v1084_v0 }
 0x112   :  { %862 = vmatpush3.msra.mxu1 %v349_v57 }
 0x113   :  { %863 = vmatprep.subr.mxu1 %v1084_v0 }
 0x114   :  { %864 = vmatpush3.msra.mxu1 %v348_v58 }
 0x115   :  { %865 = vmatprep.subr.mxu1 %v1084_v0 }
 0x116   :  { %866 = vmatpush3.msra.mxu1 %v347_v59 }
 0x117   :  { %867 = vmatprep.subr.mxu1 %v1084_v0 }
 0x118   :  { %868 = vmatpush3.msra.mxu1 %v346_v60 }
 0x119   :  { %869 = vmatprep.subr.mxu1 %v1084_v0 }
 0x11a   :  { %870 = vmatpush3.msra.mxu1 %v345_v61 }
 0x11b   :  { %871 = vmatprep.subr.mxu1 %v1084_v0 }
 0x11c   :  { %872 = vmatpush3.msra.mxu1 %v344_v62 }
 0x11d   :  { %873 = vmatprep.subr.mxu1 %v1084_v0 }
 0x11e   :  { %874 = vmatpush3.msra.mxu1 %v343_v63 }
 0x11f   :  { %875 = vmatprep.subr.mxu1 %v1084_v0 }
 0x120   :  { %876 = vmatpush3.msra.mxu1 %v342_v1 }
 0x121   :  { %877 = vmatprep.subr.mxu1 %v1084_v0 }
 0x122   :  { %878 = vmatpush3.msra.mxu1 %v341_v2 }
 0x123   :  { %879 = vmatprep.subr.mxu1 %v1084_v0 }
 0x124   :  { %880 = vmatpush3.msra.mxu1 %v340_v3 }
 0x125   :  { %881 = vmatprep.subr.mxu1 %v1084_v0 }
 0x126   :  { %882 = vmatpush3.msra.mxu1 %v339_v4 }
 0x127   :  { %883 = vmatprep.subr.mxu1 %v1084_v0 }
 0x128   :  { %884 = vmatpush3.msra.mxu1 %v338_v10 }
 0x129   :  { %885 = vmatprep.subr.mxu1 %v1084_v0 }
 0x12a   :  { %886 = vmatpush3.msra.mxu1 %v337_v11 }
 0x12b   :  { %887 = vmatprep.subr.mxu1 %v1084_v0 }
 0x12c   :  { %888 = vmatpush3.msra.mxu1 %v336_v12 }
 0x12d   :  { %927 = vmatprep.subr.mxu1 %v1084_v0 }
 0x1cd   :  { %v236_v6 = vpop.f32.mrf.mxu1 }
 0x1ce   :  { %v237_v7 = vadd.f32 %v645_v5, %v236_v6 }
 0x1cf   :  { %v821_v8 = vpop.f32.mrf.mxu1 }
 0x1d0   :  { %v240_v9 = vmax.f32 %v237_v7, 0.0 }
 0x1d2   :  { %855 = vmatmul.mubr.f32.vlgmr.msra.gmra.mxu0 %v240_v9 }
 0x1d3   :  { %924 = vmatprep.mubr.msk.f32.mxu0 %vm1085_vm0, %v1084_v0  ;;  %893 = vmatpush3.msra.mxu0 %v444_v13 }
 0x1d4   :  { %894 = vmatprep.subr.mxu0 %v1084_v0 }
 0x1d5   :  { %895 = vmatpush3.msra.mxu0 %v443_v14 }
 0x1d6   :  { %896 = vmatprep.subr.mxu0 %v1084_v0 }
 0x1d7   :  { %897 = vmatpush3.msra.mxu0 %v442_v15 }
 0x1d8   :  { %898 = vmatprep.subr.mxu0 %v1084_v0 }
 0x1d9   :  { %899 = vmatpush3.msra.mxu0 %v441_v16 }
 0x1da   :  { %900 = vmatprep.subr.mxu0 %v1084_v0 }
 0x1db   :  { %901 = vmatpush3.msra.mxu0 %v440_v17 }
 0x1dc   :  { %902 = vmatprep.subr.mxu0 %v1084_v0 }
 0x1dd   :  { %903 = vmatpush3.msra.mxu0 %v439_v18 }
 0x1de   :  { %904 = vmatprep.subr.mxu0 %v1084_v0 }
 0x1df   :  { %905 = vmatpush3.msra.mxu0 %v438_v19 }
 0x1e0   :  { %906 = vmatprep.subr.mxu0 %v1084_v0 }
 0x1e1   :  { %907 = vmatpush3.msra.mxu0 %v437_v20 }
 0x1e2   :  { %908 = vmatprep.subr.mxu0 %v1084_v0 }
 0x1e3   :  { %909 = vmatpush3.msra.mxu0 %v436_v21 }
 0x1e4   :  { %910 = vmatprep.subr.mxu0 %v1084_v0 }
 0x1e5   :  { %911 = vmatpush3.msra.mxu0 %v435_v22 }
 0x1e6   :  { %912 = vmatprep.subr.mxu0 %v1084_v0 }
 0x1e7   :  { %913 = vmatpush3.msra.mxu0 %v434_v23 }
 0x1e8   :  { %914 = vmatprep.subr.mxu0 %v1084_v0 }
 0x1e9   :  { %915 = vmatpush3.msra.mxu0 %v433_v24 }
 0x1ea   :  { %916 = vmatprep.subr.mxu0 %v1084_v0 }
 0x1eb   :  { %917 = vmatpush3.msra.mxu0 %v432_v25 }
 0x1ec   :  { %918 = vmatprep.subr.mxu0 %v1084_v0 }
 0x1ed   :  { %919 = vmatpush3.msra.mxu0 %v431_v31 }
 0x1ee   :  { %920 = vmatprep.subr.mxu0 %v1084_v0 }
 0x1ef   :  { %921 = vmatpush3.msra.mxu0 %v430_v32 }
 0x1f0   :  { %922 = vmatprep.subr.mxu0 %v1084_v0 }
 0x1f1   :  { %923 = vmatpush3.msra.mxu0 %v429_v33 }
 0x292   :  { %v329_v27 = vpop.f32.mrf.mxu0 }
 0x293   :  { %v330_v28 = vadd.f32 %v646_v26, %v329_v27 }
 0x294   :  { %v856_v29 = vpop.f32.mrf.mxu0 }
 0x295   :  { %v333_v30 = vmax.f32 %v330_v28, 0.0 }
 0x297   :  { %334 = vst [vmem:[#allocation8] sm:$0xff] %v333_v30  ;;  %890 = vmatmul.mubr.f32.vlgmr.msra.gmra.mxu1 %v333_v30 }
 0x298   :  { %959 = vmatprep.mubr.msk.f32.mxu1 %vm1085_vm0, %v1084_v0  ;;  %928 = vmatpush3.msra.mxu1 %v537_v34 }
 0x299   :  { %929 = vmatprep.subr.mxu1 %v1084_v0 }
 0x29a   :  { %930 = vmatpush3.msra.mxu1 %v536_v35 }
 0x29b   :  { %931 = vmatprep.subr.mxu1 %v1084_v0 }
 0x29c   :  { %932 = vmatpush3.msra.mxu1 %v535_v36 }
 0x29d   :  { %933 = vmatprep.subr.mxu1 %v1084_v0 }
 0x29e   :  { %934 = vmatpush3.msra.mxu1 %v534_v37 }
 0x29f   :  { %935 = vmatprep.subr.mxu1 %v1084_v0 }
 0x2a0   :  { %936 = vmatpush3.msra.mxu1 %v533_v38 }
 0x2a1   :  { %937 = vmatprep.subr.mxu1 %v1084_v0 }
 0x2a2   :  { %938 = vmatpush3.msra.mxu1 %v532_v39 }
 0x2a3   :  { %939 = vmatprep.subr.mxu1 %v1084_v0 }
 0x2a4   :  { %940 = vmatpush3.msra.mxu1 %v531_v40 }
 0x2a5   :  { %941 = vmatprep.subr.mxu1 %v1084_v0 }
 0x2a6   :  { %942 = vmatpush3.msra.mxu1 %v530_v41 }
 0x2a7   :  { %943 = vmatprep.subr.mxu1 %v1084_v0 }
 0x2a8   :  { %944 = vmatpush3.msra.mxu1 %v529_v42 }
 0x2a9   :  { %945 = vmatprep.subr.mxu1 %v1084_v0 }
 0x2aa   :  { %946 = vmatpush3.msra.mxu1 %v528_v43 }
 0x2ab   :  { %947 = vmatprep.subr.mxu1 %v1084_v0 }
 0x2ac   :  { %948 = vmatpush3.msra.mxu1 %v527_v44 }
 0x2ad   :  { %949 = vmatprep.subr.mxu1 %v1084_v0 }
 0x2ae   :  { %950 = vmatpush3.msra.mxu1 %v526_v45 }
 0x2af   :  { %951 = vmatprep.subr.mxu1 %v1084_v0 }
 0x2b0   :  { %952 = vmatpush3.msra.mxu1 %v525_v46 }
 0x2b1   :  { %953 = vmatprep.subr.mxu1 %v1084_v0 }
 0x2b2   :  { %954 = vmatpush3.msra.mxu1 %v524_v52 }
 0x2b3   :  { %955 = vmatprep.subr.mxu1 %v1084_v0 }
 0x2b4   :  { %956 = vmatpush3.msra.mxu1 %v523_v53 }
 0x2b5   :  { %957 = vmatprep.subr.mxu1 %v1084_v0 }
 0x2b6   :  { %958 = vmatpush3.msra.mxu1 %v522_v54 }
 0x357   :  { %v423_v48 = vpop.f32.mrf.mxu1 }
 0x358   :  { %v424_v49 = vadd.f32 %v647_v47, %v423_v48 }
 0x359   :  { %v891_v50 = vpop.f32.mrf.mxu1 }
 0x35a   :  { %v427_v51 = vmax.f32 %v424_v49, 0.0 }
 0x35c   :  { %925 = vmatmul.mubr.f32.vlgmr.msra.gmra.mxu0 %v427_v51 }
 0x41c   :  { %v516_v56 = vpop.f32.mrf.mxu0 }
 0x41d   :  { %v517_v57 = vadd.f32 %v648_v55, %v516_v56 }
 0x41e   :  { %v926_v58 = vpop.f32.mrf.mxu0 }
 0x41f   :  { %v520_v59 = vmax.f32 %v517_v57, 0.0 }
 0x421   :  { %960 = vmatmul.mubr.f32.vlgmr.msra.gmra.mxu1 %v520_v59 }
 0x422   :  { %1042 = shalt.err (!%p1039_p5)
}
 0x423   :  { %623 = dma.vmem_to_hbm [thread:$0]  %s621_s2, 128, %s1239_s3, [#allocation4]   ;;  %v649_v0 = vld [vmem:[#allocation7 + $0x5] ss:$0 sm:$0xff] }
 0x424   :  { %s1087_s8 = smov [#allocation9]  }
 0x425   :  { %s630_s9 = sshll.u32 %s1087_s8, 4  ;;  %s631_s9 = int_to_ptr.vmem [resolvable:$true] %s630_s9 }
 0x426   :  { %s1051_s10 = scalar_lea.vmem %s631_s9, 128  ;;  %p1056_p7 = scmp.lt.s32.totalorder %s631_s9, %s631_s9 }
 0x427   :  { %p1052_p6 = scmp.ne.s32.totalorder %s631_s9, %s1051_s10  ;;  %p1057_p8 = scmp.lt.s32.totalorder %s1051_s10, %s1051_s10 }
 0x429   :  { %p1058_p9 = por %p1057_p8, %p1056_p7 }
 0x42b   :  { %p1059_p10 = pnand %p1058_p9, %p1052_p6 }
 0x4e1   :  { %v609_v60 = vpop.f32.mrf.mxu1 }
 0x4e2   :  { %v610_v61 = vadd.f32 %v649_v0, %v609_v60 }
 0x4e3   :  { %v961_v62 = vpop.f32.mrf.mxu1 }
 0x4e4   :  { %613 = vst [vmem:[#allocation9] sm:$0xff] %v610_v61 }
 0x4e5   :  { %1062 = shalt.err (!%p1059_p10)
}
 0x4e6   :  { %633 = dma.vmem_to_hbm [thread:$0]  %s631_s9, 128, %s1240_s4, [#allocation10]  }
 0x4e7   :  { %1075 = dma.done.wait [#allocation4], 128  }
 0x4e8   :  { %1076 = vsyncadd [#allocation4], 4294967168 }
 0x4e9   :  { %1077 = dma.done.wait [#allocation10], 128  }
 0x4ea   :  { %1078 = vsyncadd [#allocation10], 4294967168 }
 0x4eb   :  { %640 = vsyncpa [#allocation3], 1 }
 0x4ec   :  { %641 = vsyncpa [#allocation6], 1 }
 0x4ed   :  { %642 = vsyncpa [#allocation4], 1 }
 0x4ee   :  { %643 = vsyncpa [#allocation10], 1 }

</bundles_post_ra>
